<compile_context>
chip_gen: v6e
topology: v6e:2x2x1
jax: 0.10.0
libtpu: 0.0.40
codegen_flags: <defaults>
</compile_context>

<pallas_src>
import jax
import jax.numpy as jnp
from jax import lax
from jax.experimental import pallas as pl
from jax.experimental.pallas import tpu as pltpu

_LN_EPS = 1e-5  # torch.nn.LayerNorm default


def _transpose_kernel(x_ref, o_ref):
    # x_ref: (C, TILE_L) lane-dense block; o_ref: (TILE_L, C).
    o_ref[...] = x_ref[...].T


def _transpose_ln_kernel(x_ref, gamma_ref, beta_ref, o_ref):
    # x_ref: (C, TILE_L); gamma_ref/beta_ref: (C, 1); o_ref: (TILE_L, C).
    # Stats are computed per column (= per token) in the lane-dense layout:
    # reduction over the sublane (C) axis, broadcast back across sublanes.
    x = x_ref[...].astype(jnp.float32)                       # (C, T)
    mean = jnp.mean(x, axis=0, keepdims=True)                # (1, T)
    centered = x - mean
    var = jnp.mean(centered * centered, axis=0, keepdims=True)
    y = centered * lax.rsqrt(var + _LN_EPS)                  # (C, T)
    y = y * gamma_ref[...] + beta_ref[...]                   # (C, 1) broadcast over lanes
    # Cast first (halves XLU traffic for bf16 outputs), then one transpose.
    o_ref[...] = y.astype(o_ref.dtype).T


def _choose_tile_l(L, C, itemsize):
    """Largest lane tile (multiple of 128, capped at 2048) such that one
    (input block + output block) pair stays around ~2 MiB; with double
    buffering this is well inside the scoped-VMEM budget on v5e/v6e/v7x."""
    budget_bytes = 2 * 1024 * 1024
    t = budget_bytes // max(1, 2 * C * itemsize)
    t = max(128, min(2048, t))
    t = (t // 128) * 128
    return L if L <= t else t


def patch_embed(x, gamma=None, beta=None, *, tile_l=None):
    """x: (B, C, H, W) -> (B, H*W, C). If gamma/beta given, LayerNorm over C."""
    B, C, H, W = x.shape
    L = H * W
    x3 = x.reshape(B, C, L)  # free, contiguous view (no data-dependent compute)

    itemsize = jnp.dtype(x.dtype).itemsize
    if tile_l is None:
        tile_l = _choose_tile_l(L, C, itemsize)
    tile_l = min(int(tile_l), L)
    if tile_l < L and tile_l % 128 != 0:
        raise ValueError("tile_l must be a multiple of 128 when it does not cover L")

    grid = (B, pl.cdiv(L, tile_l))
    out_shape = jax.ShapeDtypeStruct((B, L, C), x.dtype)
    compiler_params = pltpu.CompilerParams(
        dimension_semantics=("parallel", "parallel"),
        vmem_limit_bytes=32 * 1024 * 1024,  # safe on all of v5e/v6e/v7x
    )

    in_x_spec = pl.BlockSpec((None, C, tile_l), lambda b, l: (b, 0, l))
    out_spec = pl.BlockSpec((None, tile_l, C), lambda b, l: (b, l, 0))
    bytes_accessed = 2 * B * C * L * itemsize

    if gamma is None:
        cost = pl.CostEstimate(flops=0, transcendentals=0,
                               bytes_accessed=bytes_accessed)
        return pl.pallas_call(
            _transpose_kernel,
            out_shape=out_shape,
            grid_spec=pltpu.PrefetchScalarGridSpec(
                num_scalar_prefetch=0,
                grid=grid,
                in_specs=[in_x_spec],
                out_specs=out_spec,
            ),
            compiler_params=compiler_params,
            cost_estimate=cost,
        )(x3)

    gamma2 = gamma.reshape(C, 1)
    beta2 = beta.reshape(C, 1)
    cost = pl.CostEstimate(
        flops=8 * B * L * C,
        transcendentals=B * L,  # rsqrt per token
        bytes_accessed=bytes_accessed + 2 * C * jnp.dtype(gamma2.dtype).itemsize,
    )
    return pl.pallas_call(
        _transpose_ln_kernel,
        out_shape=out_shape,
        grid_spec=pltpu.PrefetchScalarGridSpec(
            num_scalar_prefetch=0,
            grid=grid,
            in_specs=[
                in_x_spec,
                pl.BlockSpec((C, 1), lambda b, l: (0, 0)),
                pl.BlockSpec((C, 1), lambda b, l: (0, 0)),
            ],
            out_specs=out_spec,
        ),
        compiler_params=compiler_params,
        cost_estimate=cost,
    )(x3, gamma2, beta2)


def _reference(x, gamma=None, beta=None):
    B, C, H, W = x.shape
    y = jnp.transpose(x.reshape(B, C, H * W), (0, 2, 1))
    if gamma is not None:
        yf = y.astype(jnp.float32)
        mean = jnp.mean(yf, axis=-1, keepdims=True)
        var = jnp.mean((yf - mean) ** 2, axis=-1, keepdims=True)
        yf = (yf - mean) / jnp.sqrt(var + _LN_EPS)
        y = (yf * gamma.reshape(1, 1, C) + beta.reshape(1, 1, C)).astype(x.dtype)
    return y


if __name__ == "__main__":
    key = jax.random.PRNGKey(0)
    kx, kg, kb, kx2 = jax.random.split(key, 4)

    # Small shapes consistent with the module: B=2, embed_dim(C)=32, H=W=16.
    B, C, H, W = 2, 32, 16, 16
    x = jax.random.normal(kx, (B, C, H, W), dtype=jnp.float32)

    # Default module config: norm_layer=None (pure flatten+transpose).
    out_none = jax.block_until_ready(patch_embed(x))
    ref_none = _reference(x)
    assert out_none.shape == (B, H * W, C)
    assert jnp.allclose(out_none, ref_none, atol=1e-6), "no-norm path mismatch"

    # Optional norm_layer=nn.LayerNorm(embed_dim): deterministic synthetic params.
    gamma = jax.random.normal(kg, (C,), dtype=jnp.float32)
    beta = jax.random.normal(kb, (C,), dtype=jnp.float32)
    out_ln = jax.block_until_ready(patch_embed(x, gamma, beta))
    ref_ln = _reference(x, gamma, beta)
    assert out_ln.shape == (B, H * W, C)
    assert jnp.allclose(out_ln, ref_ln, atol=1e-5), "layernorm path mismatch"

    # Exercise the L-tiled pipeline explicitly: multi-tile grid + ragged last tile
    # (L = 16*20 = 320 -> three 128-wide tiles, last one partial / masked store).
    H2, W2 = 16, 20
    x2 = jax.random.normal(kx2, (B, C, H2, W2), dtype=jnp.float32)
    out_t_ln = jax.block_until_ready(patch_embed(x2, gamma, beta, tile_l=128))
    assert out_t_ln.shape == (B, H2 * W2, C)
    assert jnp.allclose(out_t_ln, _reference(x2, gamma, beta), atol=1e-5), \
        "tiled layernorm path mismatch"
    out_t_nn = jax.block_until_ready(patch_embed(x2, tile_l=128))
    assert jnp.allclose(out_t_nn, _reference(x2), atol=1e-6), \
        "tiled no-norm path mismatch"

    print("KERNEL_OK")
</pallas_src>

<mosaic_0001>
module attributes {stable_mosaic.version = 11 : i64} {
  func.func @_transpose_kernel(%arg0: i32, %arg1: i32, %arg2: memref<1x32x256xf32, #tpu.memory_space<vmem>>, %arg3: memref<1x256x32xf32, #tpu.memory_space<vmem>>) attributes {dimension_semantics = [#tpu.dimension_semantics<parallel>, #tpu.dimension_semantics<parallel>], iteration_bounds = array<i64: 2, 1>, scalar_prefetch = 0 : i64, scratch_operands = 0 : i64, tpu.core_type = #tpu.core_type<tc>, window_params = [{transform_indices = @transform_0, window_bounds = array<i64: 1, 32, 256>}, {transform_indices = @transform_1, window_bounds = array<i64: 1, 256, 32>}]} {
    %c0 = arith.constant 0 : index
    %c0_0 = arith.constant 0 : index
    %c0_1 = arith.constant 0 : index
    %0 = vector.load %arg2[%c0, %c0_0, %c0_1] : memref<1x32x256xf32, #tpu.memory_space<vmem>>, vector<1x32x256xf32>
    %1 = vector.shape_cast %0 : vector<1x32x256xf32> to vector<32x256xf32>
    %2 = tpu.transpose %1, [1, 0] : vector<32x256xf32> -> vector<256x32xf32>
    %c0_2 = arith.constant 0 : index
    %c0_3 = arith.constant 0 : index
    %c0_4 = arith.constant 0 : index
    %3 = vector.load %arg3[%c0_2, %c0_3, %c0_4] : memref<1x256x32xf32, #tpu.memory_space<vmem>>, vector<1x256x32xf32>
    %4 = vector.shape_cast %3 : vector<1x256x32xf32> to vector<256x32xf32>
    %5 = vector.shape_cast %2 : vector<256x32xf32> to vector<1x256x32xf32>
    tpu.vector_store %arg3[%c0_2, %c0_3, %c0_4], %5 {strides = array<i32>} : memref<1x256x32xf32, #tpu.memory_space<vmem>>, vector<1x256x32xf32>,
    return
  }
  func.func @transform_0(%arg0: i32, %arg1: i32) -> (i32, i32, i32) {
    %c0_i32 = arith.constant 0 : i32
    %c0_i32_0 = arith.constant 0 : i32
    return %arg0, %c0_i32, %arg1 : i32, i32, i32
  }
  func.func @transform_1(%arg0: i32, %arg1: i32) -> (i32, i32, i32) {
    %c0_i32 = arith.constant 0 : i32
    %c0_i32_0 = arith.constant 0 : i32
    return %arg0, %arg1, %c0_i32 : i32, i32, i32
  }
}

</mosaic_0001>

<bundles_post_ra>
// kernel: tpu_custom_call.1
= control target key start
LH: loop header
LB: loop body
LE: loop exit
PB: predicated region body
PF: predicated region fallthrough
CT: control target
= control target key end

     0   :  { %6 = vsyncpa [#allocation3], 0  ;;  %s693_s0 = inlined_call_operand.hbm [shape: f32[2,32,256], index: 0, kind: input, shape index: {}]   ;;  %s694_s1 = inlined_call_operand.vmem [shape: f32[2,256,32], index: 1, kind: output, shape index: {}]  }
   0x1   :  { %8 = vsyncpa [#allocation3 + $0x1], 0  ;;  %s531_s6 = smov 0   ;;  %s533_s7 = smov 0  }
   0x2   :  { %s535_s8 = smov 0   ;;  %s537_s9 = smov 0  }
   0x3   :  { %s539_s10 = smov 0   ;;  %s541_s11 = smov 0  }
   0x4 LB: > { %s365_s12 = sadd.s32 4294967295, %s516_s11   ;;  %s26_s13 = sadd.s32 1, %s512_s10  ;;  %s516_s11 = sphi %s541_s11, %s14_s11   ;;  %s512_s10 = sphi %s539_s10, %s702_s10   ;;  %s508_s9 = sphi %s537_s9, %s701_s9   ;;  %s504_s8 = sphi %s535_s8, %s700_s8   ;;  %s500_s7 = sphi %s533_s7, %s699_s7   ;;  %s496_s6 = sphi %s531_s6, %s698_s6  }
   0x5   : > { %p28_p0 = scmp.ge.s32.totalorder %s26_s13, 2  ;;  %s35_s14 = sadd.s32 1, %s504_s8 }
   0x6   : > { %p42_p1 = scmp.ne.s32.totalorder %s504_s8, %s500_s7  ;;  %p43_p2 = scmp.eq.s32.totalorder %s516_s11, 0 }
   0x7   : > { %s704_s13 = smov (%p28_p0, %s26_s13), 0  ;;  %p48_p4 = scmp.ne.s32.totalorder %s500_s7, %s496_s6 }
   0x8   : > { %p567_p3 = por %p43_p2, %p42_p1  ;;  %s30_s16 = ssub.s32 %s512_s10, %s704_s13 }
   0x9   : > { %p49_p5 = scmp.eq.s32.totalorder %s365_s12, 0  ;;  %p33_p6 = scmp.eq.s32.totalorder %s30_s16, 0 }
   0xa   : > { %p386_p8 = scmp.lt.s32.totalorder %s516_s11, 2  ;;  %s100_s19 = sand.u32 1, %s504_s8  }
   0xb   : > { %p574_p7 = por %p49_p5, %p48_p4  ;;  %s378_s20 = sshll.u32 %s512_s10, 10 }
   0xc   : > { %s580_s18 = scalar_select %p33_p6, %s504_s8, %s35_s14  }
   0xd   : > { %s369_s21 = sshll.u32 %s100_s19, 6  ;;  %s112_s24 = scalar_lea.hbm %s693_s0, %s378_s20 }
   0xe   : > { %s104_s25 = scalar_lea.vmem [#allocation2], %s369_s21  ;;  %p589_p9 = pnand %p386_p8, %p567_p3 }
   0xf   : > { %s113_s26 = sshll.u32 %s104_s25, 4  ;;  %s101_s28 = scalar_lea.sflag [#allocation3], %s100_s19  ;;  %s114_s26 = int_to_ptr.vmem [resolvable:$true] %s113_s26 }
  0x10   : > { %p440_p10 = pneg %p589_p9  ;;  %s451_s29 = scalar_lea.vmem %s114_s26, 1024 }
  0x11   : > { %p452_p11 = scmp.ne.s32.totalorder %s114_s26, %s451_s29  ;;  %s518_s30 = smov [#allocation2]  }
  0x12   : > { %s456_s2 = sshll.u32 %s518_s30, 4  ;;  %s457_s2 = int_to_ptr.vmem [resolvable:$false] %s456_s2 }
  0x13   : > { %p454_p12 = pnand %p452_p11, %p440_p10  ;;  %s458_s3 = scalar_lea.vmem %s457_s2, 2048 }
  0x14   : > { %p459_p0 = scmp.lt.s32.totalorder %s114_s26, %s457_s2  ;;  %p460_p1 = scmp.lt.s32.totalorder %s458_s3, %s451_s29 }
  0x15   : > { %p455_p13 = pneg %p454_p12 }
  0x16   : > { %p461_p2 = por %p460_p1, %p459_p0 }
  0x18   : > { %p462_p3 = pnand %p461_p2, %p455_p13 }
  0x1a   : > { %465 = shalt.err (!%p462_p3)
}
  0x1b   : > { %s519_s4 = smov 256   ;;  %s520_s5 = smov 16  }
  0x1c   : > { %385 = dma.hbm_to_vmem [thread:$0]  (!%p589_p9), %s112_s24, 1024, %s114_s26, %s101_s28, %s519_s4, %s519_s4, %s520_s5  }
  0x1d   : > { %p372_p4 = scmp.ge.s32.totalorder %s516_s11, 1  ;;  %p121_p5 = scmp.lt.s32.totalorder %s516_s11, 3 }
  0x1f   : > { %p122_p6 = pnand %p372_p4, %p121_p5 }
  0x20   : > { %s127_s6 = sand.u32 (!%p122_p6), 1, %s500_s7  }
  0x21   : > { %125 = sbr.rel (%p122_p6) target bundleno = 226 (0xe2), region = 24  ;;  %s373_s12 = sshll.u32 (!%p122_p6), %s127_s6, 6 }
  0x22   : > { %s128_s14 = scalar_lea.sflag (!%p122_p6), [#allocation3], %s127_s6  ;;  %s131_s15 = scalar_lea.vmem (!%p122_p6), [#allocation2], %s373_s12 }
  0x26   : > { %491 = dma.done.wait (%p574_p7), %s128_s14, 1024  }
  0x27   : > { %493 = vsyncadd (%p574_p7), %s128_s14, 4294966272  ;;  %v166_v0 = vld [vmem:[%s131_s15 + $0x8] sm:$0xff]  ;;  %v165_v1 = vld [vmem:[%s131_s15] sm:$0xff]  ;;  %p156_p8 = scmp.lt.s32.totalorder %s508_s9, 1  ;;  %vm237_vm0 = vcmask 261120  }
  0x28   : > { %205 = vxpose.xlu1.b32.start [1/4] (short) %v166_v0, 128  ;;  %173 = vxpose.xlu0.b32.start [1/4] (short) %v165_v1, 128  ;;  %v168_v2 = vld [vmem:[%s131_s15 + $0x18] sm:$0xff]  ;;  %v167_v3 = vld [vmem:[%s131_s15 + $0x10] sm:$0xff]  ;;  %v170_v4 = vld [vmem:[%s131_s15 + $0x28] sm:$0xff] }
  0x29   : > { %v169_v5 = vld [vmem:[%s131_s15 + $0x20] sm:$0xff]  ;;  %v172_v6 = vld [vmem:[%s131_s15 + $0x38] sm:$0xff]  ;;  %v171_v7 = vld [vmem:[%s131_s15 + $0x30] sm:$0xff]  ;;  %s706_s9 = smov (!%p156_p8, %s508_s9), 1 }
  0x2a   : > { %s379_s16 = sshll.u32 %s706_s9, 8 }
  0x2b   : > { %s609_s20 = scalar_lea.vmem %s694_s1, %s379_s16 }
  0x2c   : > { %206 = vxpose.xlu1.b32.cont [2/4] (short) %v168_v2, 128  ;;  %174 = vxpose.xlu0.b32.cont [2/4] (short) %v167_v3, 128 }
  0x30   : > { %207 = vxpose.xlu1.b32.cont [3/4] (short) %v170_v4, 128  ;;  %175 = vxpose.xlu0.b32.cont [3/4] (short) %v169_v5, 128 }
  0x34   : > { %208 = vxpose.xlu1.b32.end [4/4] (short) %v172_v6, 128  ;;  %176 = vxpose.xlu0.b32.end [4/4] (short) %v171_v7, 128 }
  0xa4   : > { %v221_v8 = vpop.trf.xlu1  ;;  %v189_v9 = vpop.trf.xlu0 }
  0xa5   : > { %254 = vst.msk [vmem:[%s609_s20 + $0x80] sm:$0xff] %vm237_vm0, %v221_v8  ;;  %238 = vst.msk [vmem:[%s609_s20] sm:$0xff] %vm237_vm0, %v189_v9 }
  0xa8   : > { %v222_v10 = vpop.trf.xlu1  ;;  %v190_v11 = vpop.trf.xlu0 }
  0xa9   : > { %255 = vst.msk [vmem:[%s609_s20 + $0x88] sm:$0xff] %vm237_vm0, %v222_v10  ;;  %239 = vst.msk [vmem:[%s609_s20 + $0x8] sm:$0xff] %vm237_vm0, %v190_v11 }
  0xac   : > { %v223_v12 = vpop.trf.xlu1  ;;  %v191_v13 = vpop.trf.xlu0 }
  0xad   : > { %256 = vst.msk [vmem:[%s609_s20 + $0x90] sm:$0xff] %vm237_vm0, %v223_v12  ;;  %240 = vst.msk [vmem:[%s609_s20 + $0x10] sm:$0xff] %vm237_vm0, %v191_v13 }
  0xb0   : > { %v224_v14 = vpop.trf.xlu1  ;;  %v192_v15 = vpop.trf.xlu0 }
  0xb1   : > { %257 = vst.msk [vmem:[%s609_s20 + $0x98] sm:$0xff] %vm237_vm0, %v224_v14  ;;  %241 = vst.msk [vmem:[%s609_s20 + $0x18] sm:$0xff] %vm237_vm0, %v192_v15 }
  0xb4   : > { %v225_v16 = vpop.trf.xlu1  ;;  %v193_v17 = vpop.trf.xlu0 }
  0xb5   : > { %258 = vst.msk [vmem:[%s609_s20 + $0xa0] sm:$0xff] %vm237_vm0, %v225_v16  ;;  %242 = vst.msk [vmem:[%s609_s20 + $0x20] sm:$0xff] %vm237_vm0, %v193_v17 }
  0xb8   : > { %v226_v18 = vpop.trf.xlu1  ;;  %v194_v19 = vpop.trf.xlu0 }
  0xb9   : > { %259 = vst.msk [vmem:[%s609_s20 + $0xa8] sm:$0xff] %vm237_vm0, %v226_v18  ;;  %243 = vst.msk [vmem:[%s609_s20 + $0x28] sm:$0xff] %vm237_vm0, %v194_v19 }
  0xbc   : > { %v227_v20 = vpop.trf.xlu1  ;;  %v195_v21 = vpop.trf.xlu0 }
  0xbd   : > { %260 = vst.msk [vmem:[%s609_s20 + $0xb0] sm:$0xff] %vm237_vm0, %v227_v20  ;;  %244 = vst.msk [vmem:[%s609_s20 + $0x30] sm:$0xff] %vm237_vm0, %v195_v21 }
  0xc0   : > { %v228_v22 = vpop.trf.xlu1  ;;  %v196_v23 = vpop.trf.xlu0 }
  0xc1   : > { %261 = vst.msk [vmem:[%s609_s20 + $0xb8] sm:$0xff] %vm237_vm0, %v228_v22  ;;  %245 = vst.msk [vmem:[%s609_s20 + $0x38] sm:$0xff] %vm237_vm0, %v196_v23 }
  0xc4   : > { %v229_v24 = vpop.trf.xlu1  ;;  %v197_v25 = vpop.trf.xlu0 }
  0xc5   : > { %262 = vst.msk [vmem:[%s609_s20 + $0xc0] sm:$0xff] %vm237_vm0, %v229_v24  ;;  %246 = vst.msk [vmem:[%s609_s20 + $0x40] sm:$0xff] %vm237_vm0, %v197_v25 }
  0xc8   : > { %v230_v26 = vpop.trf.xlu1  ;;  %v198_v27 = vpop.trf.xlu0 }
  0xc9   : > { %263 = vst.msk [vmem:[%s609_s20 + $0xc8] sm:$0xff] %vm237_vm0, %v230_v26  ;;  %247 = vst.msk [vmem:[%s609_s20 + $0x48] sm:$0xff] %vm237_vm0, %v198_v27 }
  0xcc   : > { %v231_v28 = vpop.trf.xlu1  ;;  %v199_v29 = vpop.trf.xlu0 }
  0xcd   : > { %264 = vst.msk [vmem:[%s609_s20 + $0xd0] sm:$0xff] %vm237_vm0, %v231_v28  ;;  %248 = vst.msk [vmem:[%s609_s20 + $0x50] sm:$0xff] %vm237_vm0, %v199_v29 }
  0xd0   : > { %v232_v30 = vpop.trf.xlu1  ;;  %v200_v31 = vpop.trf.xlu0 }
  0xd1   : > { %265 = vst.msk [vmem:[%s609_s20 + $0xd8] sm:$0xff] %vm237_vm0, %v232_v30  ;;  %249 = vst.msk [vmem:[%s609_s20 + $0x58] sm:$0xff] %vm237_vm0, %v200_v31 }
  0xd4   : > { %v233_v32 = vpop.trf.xlu1  ;;  %v201_v33 = vpop.trf.xlu0 }
  0xd5   : > { %266 = vst.msk [vmem:[%s609_s20 + $0xe0] sm:$0xff] %vm237_vm0, %v233_v32  ;;  %250 = vst.msk [vmem:[%s609_s20 + $0x60] sm:$0xff] %vm237_vm0, %v201_v33 }
  0xd8   : > { %v234_v34 = vpop.trf.xlu1  ;;  %v202_v35 = vpop.trf.xlu0 }
  0xd9   : > { %267 = vst.msk [vmem:[%s609_s20 + $0xe8] sm:$0xff] %vm237_vm0, %v234_v34  ;;  %251 = vst.msk [vmem:[%s609_s20 + $0x68] sm:$0xff] %vm237_vm0, %v202_v35 }
  0xdc   : > { %v235_v36 = vpop.trf.xlu1  ;;  %v203_v37 = vpop.trf.xlu0 }
  0xdd   : > { %268 = vst.msk [vmem:[%s609_s20 + $0xf0] sm:$0xff] %vm237_vm0, %v235_v36  ;;  %252 = vst.msk [vmem:[%s609_s20 + $0x70] sm:$0xff] %vm237_vm0, %v203_v37 }
  0xe0   : > { %v236_v38 = vpop.trf.xlu1  ;;  %v204_v39 = vpop.trf.xlu0 }
  0xe1   : > { %269 = vst.msk [vmem:[%s609_s20 + $0xf8] sm:$0xff] %vm237_vm0, %v236_v38  ;;  %253 = vst.msk [vmem:[%s609_s20 + $0x78] sm:$0xff] %vm237_vm0, %v204_v39 }
  0xe2 PF: > { %s14_s11 = sadd.s32 1, %s516_s11   ;;  %s698_s6 = smov %s500_s7 }
  0xe3   : > { %p11_p7 = scmp.ge.s32.totalorder %s14_s11, 4   ;;  %s699_s7 = smov %s504_s8 }
  0xe4   : > { %s700_s8 = smov %s580_s18  ;;  %s701_s9 = smov %s512_s10 }
  0xe5   : > { %s702_s10 = smov %s704_s13  ;;  %13 = sbr.rel (!%p11_p7) target bundleno = 4 (0x4), region = 64 }
  0xea   :  { %300 = vsyncpa [#allocation3], 1 }
  0xeb   :  { %302 = vsyncpa [#allocation3 + $0x1], 1 }

</bundles_post_ra>
